<compile_context>
chip_gen: v7x
topology: tpu7x:2x2x1
jax: 0.10.0
libtpu: 0.0.40
codegen_flags: <defaults>
</compile_context>

<pallas_src>
import functools

import jax
import jax.numpy as jnp
from jax.experimental import pallas as pl
from jax.experimental.pallas import tpu as pltpu

NUM_REG = 2          # first 2 columns -> BCEWithLogits, rest -> CrossEntropy
_NEG_BIG = -1e30     # finite "minus infinity" for masking the cls log-sum-exp


def _round_up(x, m):
    return ((x + m - 1) // m) * m


def _multitask_loss_kernel(preds_ref, targets_ref, out_ref, stage_ref, acc_ref,
                           *, batch, num_cols, tile_rows, tiles_per_core):
    C = num_cols
    R = _round_up(C, 8)      # sublane rows of the transposed view holding real cols
    tb = tile_rows
    c = pl.program_id(0)     # core-split index ("parallel")
    i = pl.program_id(1)     # batch-tile index ("arbitrary"; carries accumulator)

    @pl.when(i == 0)
    def _init():
        # Lanes [C:W) of the staging buffer are zeroed once and never written
        # again; the transposed rows they become are masked out of both heads.
        stage_ref[...] = jnp.zeros_like(stage_ref)
        acc_ref[...] = jnp.zeros_like(acc_ref)

    def to_lanes(src_ref):
        # (tb, C) -> lane-dense (R, tb): batch rows on lanes, columns on
        # sublanes.  Stage into a lane-aligned (tb, W) buffer so the transpose
        # is the fully supported aligned case, then keep only the sublane
        # groups carrying real columns.  The returned value is a snapshot, so
        # the single staging buffer can be reused for the second operand.
        stage_ref[:, :C] = src_ref[...].astype(jnp.float32)
        return jnp.transpose(stage_ref[...])[:R, :]

    xt = to_lanes(preds_ref)      # (R, tb) f32
    yt = to_lanes(targets_ref)    # (R, tb) f32

    row = jax.lax.broadcasted_iota(jnp.int32, (R, tb), 0)
    is_cls = jnp.logical_and(row >= NUM_REG, row < C)

    # Padded batch rows (last tile) must be excluded from the BCE mean; CE needs
    # no row mask because padded targets are all-zero.  Mask cost is now a
    # single (1, tb) lane vector, not a full-tile iota/compare/select.
    lane = jax.lax.broadcasted_iota(jnp.int32, (1, tb), 1)
    global_row = (c * tiles_per_core + i) * tb + lane
    valid = global_row < batch                                    # (1, tb)

    # ---- regression head: stable BCE-with-logits on rows [0, NUM_REG) -------
    # Both regression rows live in the first sublane group, so only touch it.
    xr = xt[:8, :]
    yr = yt[:8, :]
    is_reg = jax.lax.broadcasted_iota(jnp.int32, (8, tb), 0) < NUM_REG
    bce = jnp.maximum(xr, 0.0) - xr * yr + jnp.log1p(jnp.exp(-jnp.abs(xr)))
    bce = jnp.where(jnp.logical_and(is_reg, valid), bce, 0.0)
    # Fold BCE's 1/NUM_REG here so both heads share the single 1/B at the end.
    acc_ref[:8, :] += bce * (1.0 / NUM_REG)

    # ---- classification head: soft-target CE on rows [NUM_REG, C) -----------
    xm = jnp.where(is_cls, xt, _NEG_BIG)      # finite mask: no -inf -> no NaN
    m = jnp.max(xm, axis=0, keepdims=True)                        # (1, tb)
    e = jnp.where(is_cls, jnp.exp(xm - m), 0.0)
    lse = m + jnp.log(jnp.sum(e, axis=0, keepdims=True))          # (1, tb)
    ce = jnp.where(is_cls, yt * (lse - xt), 0.0)                  # (R, tb)
    acc_ref[...] += ce

    @pl.when(i == tiles_per_core - 1)
    def _finalize():
        loss = jnp.sum(acc_ref[...]) * (1.0 / batch)
        # Lane-dense (8, 128) partial-output block; the wrapper reads [c*8, 0].
        out_ref[...] = jnp.full(out_ref.shape, loss, dtype=out_ref.dtype)


def multitask_loss(preds, targets, *, tile_rows=4096, core_split=1):
    """preds, targets: [B, C] (f32 or bf16), C > NUM_REG. Returns f32 loss."""
    assert preds.shape == targets.shape
    B, C = preds.shape
    assert NUM_REG < C <= 128

    # Batch tile: lane-aligned (multiple of 128) so the in-kernel transpose is
    # the aligned case, and large enough to amortize per-grid-step overhead.
    tb = min(tile_rows, _round_up(B, 128))
    tb = max(128, (tb // 128) * 128)
    chunk = core_split * tb
    padded = _round_up(B, chunk)
    tiles_per_core = padded // chunk

    if padded != B:
        pad = padded - B
        preds = jnp.pad(preds, ((0, pad), (0, 0)))
        targets = jnp.pad(targets, ((0, pad), (0, 0)))

    W = _round_up(C, 128)    # lane-aligned staging width
    R = _round_up(C, 8)      # sublane rows carrying real columns after repack

    kernel = functools.partial(
        _multitask_loss_kernel,
        batch=B, num_cols=C, tile_rows=tb, tiles_per_core=tiles_per_core)

    partials = pl.pallas_call(
        kernel,
        out_shape=jax.ShapeDtypeStruct((core_split * 8, 128), jnp.float32),
        grid_spec=pltpu.PrefetchScalarGridSpec(
            num_scalar_prefetch=0,
            grid=(core_split, tiles_per_core),
            in_specs=[
                pl.BlockSpec((tb, C), lambda c, i: (c * tiles_per_core + i, 0)),
                pl.BlockSpec((tb, C), lambda c, i: (c * tiles_per_core + i, 0)),
            ],
            # One (8,128) VMEM block per core-split; resident across the inner
            # ("arbitrary") axis, written only at the final step.
            out_specs=pl.BlockSpec((8, 128), lambda c, i: (c, 0)),
            scratch_shapes=[
                pltpu.VMEM((tb, W), jnp.float32),   # transpose staging buffer
                pltpu.VMEM((R, tb), jnp.float32),   # vector loss accumulator
            ],
        ),
        compiler_params=pltpu.CompilerParams(
            dimension_semantics=("parallel", "arbitrary"),
            vmem_limit_bytes=32 * 1024 * 1024,
        ),
    )(preds, targets)

    # Each core-split wrote its (already 1/B-scaled) partial loss; sum them.
    return jnp.sum(partials[::8, 0])


def _reference_loss(preds, targets):
    preds = preds.astype(jnp.float32)
    targets = targets.astype(jnp.float32)
    reg_x, reg_y = preds[:, :NUM_REG], targets[:, :NUM_REG]
    cls_x, cls_y = preds[:, NUM_REG:], targets[:, NUM_REG:]
    bce = (jnp.maximum(reg_x, 0.0) - reg_x * reg_y
           + jnp.log1p(jnp.exp(-jnp.abs(reg_x))))
    reg_loss = jnp.mean(bce)
    logp = jax.nn.log_softmax(cls_x, axis=-1)
    cls_loss = jnp.mean(-jnp.sum(cls_y * logp, axis=-1))
    return reg_loss + cls_loss


def _make_inputs(key, B, num_cls):
    C = NUM_REG + num_cls
    k1, k2, k3 = jax.random.split(key, 3)
    preds = jax.random.normal(k1, (B, C), dtype=jnp.float32)
    reg_t = jax.random.bernoulli(k2, 0.5, (B, NUM_REG)).astype(jnp.float32)
    cls_t = jax.nn.softmax(jax.random.normal(k3, (B, num_cls)), axis=-1)
    targets = jnp.concatenate([reg_t, cls_t], axis=1)
    return preds, targets


if __name__ == "__main__":
    key = jax.random.PRNGKey(0)
    k_small, k_big = jax.random.split(key)

    # Small case matching the module spec (B=8, 2 regression + 6 classes).
    preds, targets = _make_inputs(k_small, B=8, num_cls=6)
    loss = multitask_loss(preds, targets)
    jax.block_until_ready(loss)
    ref = _reference_loss(preds, targets)
    assert jnp.allclose(loss, ref, rtol=1e-5, atol=1e-5), (loss, ref)

    # Larger, non-tile-aligned batch (C=10 -> two sublane groups after repack)
    # to exercise tiling, batch padding and the class/row masks.
    preds2, targets2 = _make_inputs(k_big, B=1000, num_cls=8)
    loss2 = multitask_loss(preds2, targets2)
    jax.block_until_ready(loss2)
    ref2 = _reference_loss(preds2, targets2)
    assert jnp.allclose(loss2, ref2, rtol=1e-5, atol=1e-5), (loss2, ref2)

    print("KERNEL_OK")
</pallas_src>

<mosaic_0001>
module attributes {stable_mosaic.version = 11 : i64} {
  func.func @_multitask_loss_kernel(%arg0: i32, %arg1: i32, %arg2: memref<128x8xf32, #tpu.memory_space<vmem>>, %arg3: memref<128x8xf32, #tpu.memory_space<vmem>>, %arg4: memref<8x128xf32, #tpu.memory_space<vmem>>, %arg5: memref<128x128xf32, #tpu.memory_space<vmem>>, %arg6: memref<8x128xf32, #tpu.memory_space<vmem>>) attributes {dimension_semantics = [#tpu.dimension_semantics<parallel>, #tpu.dimension_semantics<arbitrary>], iteration_bounds = array<i64: 1, 1>, scalar_prefetch = 0 : i64, scratch_operands = 2 : i64, tpu.core_type = #tpu.core_type<tc>, window_params = [{transform_indices = @transform_0, window_bounds = array<i64: 128, 8>}, {transform_indices = @transform_1, window_bounds = array<i64: 128, 8>}, {transform_indices = @transform_2, window_bounds = array<i64: 8, 128>}]} {
    %c0_i32 = arith.constant 0 : i32
    %0 = arith.cmpi eq, %arg1, %c0_i32 : i32
    %1 = arith.extui %0 : i1 to i32
    %c0_i32_0 = arith.constant 0 : i32
    %2 = arith.cmpi ne, %1, %c0_i32_0 : i32
    scf.if %2 {
      %cst_32 = arith.constant 0.000000e+00 : f32
      %73 = vector.broadcast %cst_32 : f32 to vector<128x128xf32>
      %c0_33 = arith.constant 0 : index
      %c0_34 = arith.constant 0 : index
      %74 = vector.load %arg5[%c0_33, %c0_34] : memref<128x128xf32, #tpu.memory_space<vmem>>, vector<128x128xf32>
      tpu.vector_store %arg5[%c0_33, %c0_34], %73 {strides = array<i32>} : memref<128x128xf32, #tpu.memory_space<vmem>>, vector<128x128xf32>,
      %cst_35 = arith.constant 0.000000e+00 : f32
      %75 = vector.broadcast %cst_35 : f32 to vector<8x128xf32>
      %c0_36 = arith.constant 0 : index
      %c0_37 = arith.constant 0 : index
      %76 = vector.load %arg6[%c0_36, %c0_37] : memref<8x128xf32, #tpu.memory_space<vmem>>, vector<8x128xf32>
      tpu.vector_store %arg6[%c0_36, %c0_37], %75 {strides = array<i32>} : memref<8x128xf32, #tpu.memory_space<vmem>>, vector<8x128xf32>,
    } else {
    }
    %c0 = arith.constant 0 : index
    %c0_1 = arith.constant 0 : index
    %3 = vector.load %arg2[%c0, %c0_1] : memref<128x8xf32, #tpu.memory_space<vmem>>, vector<128x8xf32>
    %c0_2 = arith.constant 0 : index
    %c0_3 = arith.constant 0 : index
    %4 = vector.load %arg5[%c0_2, %c0_3] : memref<128x128xf32, #tpu.memory_space<vmem>>, vector<128x8xf32>
    tpu.vector_store %arg5[%c0_2, %c0_3], %3 {strides = array<i32>} : memref<128x128xf32, #tpu.memory_space<vmem>>, vector<128x8xf32>,
    %c0_4 = arith.constant 0 : index
    %c0_5 = arith.constant 0 : index
    %5 = vector.load %arg5[%c0_4, %c0_5] : memref<128x128xf32, #tpu.memory_space<vmem>>, vector<128x128xf32>
    %6 = tpu.transpose %5, [1, 0] : vector<128x128xf32> -> vector<128x128xf32>
    %7 = vector.extract_strided_slice %6 {offsets = [0, 0], sizes = [8, 128], strides = [1, 1]} : vector<128x128xf32> to vector<8x128xf32>
    %c0_6 = arith.constant 0 : index
    %c0_7 = arith.constant 0 : index
    %8 = vector.load %arg3[%c0_6, %c0_7] : memref<128x8xf32, #tpu.memory_space<vmem>>, vector<128x8xf32>
    %c0_8 = arith.constant 0 : index
    %c0_9 = arith.constant 0 : index
    %9 = vector.load %arg5[%c0_8, %c0_9] : memref<128x128xf32, #tpu.memory_space<vmem>>, vector<128x8xf32>
    tpu.vector_store %arg5[%c0_8, %c0_9], %8 {strides = array<i32>} : memref<128x128xf32, #tpu.memory_space<vmem>>, vector<128x8xf32>,
    %c0_10 = arith.constant 0 : index
    %c0_11 = arith.constant 0 : index
    %10 = vector.load %arg5[%c0_10, %c0_11] : memref<128x128xf32, #tpu.memory_space<vmem>>, vector<128x128xf32>
    %11 = tpu.transpose %10, [1, 0] : vector<128x128xf32> -> vector<128x128xf32>
    %12 = vector.extract_strided_slice %11 {offsets = [0, 0], sizes = [8, 128], strides = [1, 1]} : vector<128x128xf32> to vector<8x128xf32>
    %13 = tpu.iota {dimensions = array<i32: 0>} : vector<8x128xi32>
    %c2_i32 = arith.constant 2 : i32
    %14 = vector.broadcast %c2_i32 : i32 to vector<8x128xi32>
    %15 = arith.cmpi sge, %13, %14 : vector<8x128xi32>
    %c8_i32 = arith.constant 8 : i32
    %16 = vector.broadcast %c8_i32 : i32 to vector<8x128xi32>
    %17 = arith.cmpi slt, %13, %16 : vector<8x128xi32>
    %18 = arith.andi %15, %17 : vector<8x128xi1>
    %19 = tpu.iota {dimensions = array<i32: 1>} : vector<1x128xi32>
    %c1_i32 = arith.constant 1 : i32
    %20 = arith.muli %arg0, %c1_i32 : i32
    %21 = arith.addi %20, %arg1 : i32
    %c128_i32 = arith.constant 128 : i32
    %22 = arith.muli %21, %c128_i32 : i32
    %23 = vector.broadcast %22 : i32 to vector<1x128xi32>
    %24 = arith.addi %23, %19 : vector<1x128xi32>
    %c8_i32_12 = arith.constant 8 : i32
    %25 = vector.broadcast %c8_i32_12 : i32 to vector<1x128xi32>
    %26 = arith.cmpi slt, %24, %25 : vector<1x128xi32>
    %27 = tpu.iota {dimensions = array<i32: 0>} : vector<8x128xi32>
    %c2_i32_13 = arith.constant 2 : i32
    %28 = vector.broadcast %c2_i32_13 : i32 to vector<8x128xi32>
    %29 = arith.cmpi slt, %27, %28 : vector<8x128xi32>
    %cst = arith.constant 0.000000e+00 : f32
    %30 = vector.broadcast %cst : f32 to vector<8x128xf32>
    %31 = arith.maximumf %7, %30 : vector<8x128xf32>
    %32 = arith.mulf %7, %12 : vector<8x128xf32>
    %33 = arith.subf %31, %32 : vector<8x128xf32>
    %34 = math.absf %7 : vector<8x128xf32>
    %cst_14 = arith.constant 0.000000e+00 : f32
    %35 = vector.broadcast %cst_14 : f32 to vector<8x128xf32>
    %36 = arith.subf %35, %34 : vector<8x128xf32>
    %37 = math.exp %36 : vector<8x128xf32>
    %38 = math.log1p %37 : vector<8x128xf32>
    %39 = arith.addf %33, %38 : vector<8x128xf32>
    %40 = vector.broadcast %26 : vector<1x128xi1> to vector<8x128xi1>
    %41 = arith.andi %29, %40 : vector<8x128xi1>
    %cst_15 = arith.constant 0.000000e+00 : f32
    %42 = vector.broadcast %cst_15 : f32 to vector<8x128xf32>
    %43 = arith.select %41, %39, %42 : vector<8x128xi1>, vector<8x128xf32>
    %c0_16 = arith.constant 0 : index
    %c0_17 = arith.constant 0 : index
    %44 = vector.load %arg6[%c0_16, %c0_17] : memref<8x128xf32, #tpu.memory_space<vmem>>, vector<8x128xf32>
    %cst_18 = arith.constant 5.000000e-01 : f32
    %45 = vector.broadcast %cst_18 : f32 to vector<8x128xf32>
    %46 = arith.mulf %43, %45 : vector<8x128xf32>
    %47 = arith.addf %44, %46 : vector<8x128xf32>
    %c0_19 = arith.constant 0 : index
    %c0_20 = arith.constant 0 : index
    %48 = vector.load %arg6[%c0_19, %c0_20] : memref<8x128xf32, #tpu.memory_space<vmem>>, vector<8x128xf32>
    tpu.vector_store %arg6[%c0_19, %c0_20], %47 {strides = array<i32>} : memref<8x128xf32, #tpu.memory_space<vmem>>, vector<8x128xf32>,
    %cst_21 = arith.constant -1.000000e+30 : f32
    %49 = vector.broadcast %cst_21 : f32 to vector<8x128xf32>
    %50 = arith.select %18, %7, %49 : vector<8x128xi1>, vector<8x128xf32>
    %cst_22 = arith.constant dense<0xFF800000> : vector<128xf32>
    %51 = vector.multi_reduction <maximumf>, %50, %cst_22 [0] : vector<8x128xf32> to vector<128xf32>
    %52 = vector.shape_cast %51 : vector<128xf32> to vector<1x128xf32>
    %53 = vector.broadcast %52 : vector<1x128xf32> to vector<8x128xf32>
    %54 = arith.subf %50, %53 : vector<8x128xf32>
    %55 = math.exp %54 : vector<8x128xf32>
    %cst_23 = arith.constant 0.000000e+00 : f32
    %56 = vector.broadcast %cst_23 : f32 to vector<8x128xf32>
    %57 = arith.select %18, %55, %56 : vector<8x128xi1>, vector<8x128xf32>
    %cst_24 = arith.constant dense<0.000000e+00> : vector<128xf32>
    %58 = vector.multi_reduction <add>, %57, %cst_24 [0] : vector<8x128xf32> to vector<128xf32>
    %59 = vector.shape_cast %58 : vector<128xf32> to vector<1x128xf32>
    %60 = math.log %59 : vector<1x128xf32>
    %61 = arith.addf %52, %60 : vector<1x128xf32>
    %62 = vector.broadcast %61 : vector<1x128xf32> to vector<8x128xf32>
    %63 = arith.subf %62, %7 : vector<8x128xf32>
    %64 = arith.mulf %12, %63 : vector<8x128xf32>
    %cst_25 = arith.constant 0.000000e+00 : f32
    %65 = vector.broadcast %cst_25 : f32 to vector<8x128xf32>
    %66 = arith.select %18, %64, %65 : vector<8x128xi1>, vector<8x128xf32>
    %c0_26 = arith.constant 0 : index
    %c0_27 = arith.constant 0 : index
    %67 = vector.load %arg6[%c0_26, %c0_27] : memref<8x128xf32, #tpu.memory_space<vmem>>, vector<8x128xf32>
    %68 = arith.addf %67, %66 : vector<8x128xf32>
    %c0_28 = arith.constant 0 : index
    %c0_29 = arith.constant 0 : index
    %69 = vector.load %arg6[%c0_28, %c0_29] : memref<8x128xf32, #tpu.memory_space<vmem>>, vector<8x128xf32>
    tpu.vector_store %arg6[%c0_28, %c0_29], %68 {strides = array<i32>} : memref<8x128xf32, #tpu.memory_space<vmem>>, vector<8x128xf32>,
    %c0_i32_30 = arith.constant 0 : i32
    %70 = arith.cmpi eq, %arg1, %c0_i32_30 : i32
    %71 = arith.extui %70 : i1 to i32
    %c0_i32_31 = arith.constant 0 : i32
    %72 = arith.cmpi ne, %71, %c0_i32_31 : i32
    scf.if %72 {
      %c0_32 = arith.constant 0 : index
      %c0_33 = arith.constant 0 : index
      %73 = vector.load %arg6[%c0_32, %c0_33] : memref<8x128xf32, #tpu.memory_space<vmem>>, vector<8x128xf32>
      %74 = vector.shape_cast %73 : vector<8x128xf32> to vector<1x8x128xf32>
      %cst_34 = arith.constant dense<0.000000e+00> : vector<1xf32>
      %75 = vector.multi_reduction <add>, %74, %cst_34 [1, 2] : vector<1x8x128xf32> to vector<1xf32>
      %76 = vector.shape_cast %75 : vector<1xf32> to vector<1x1x1xf32>
      %77 = vector.extract %76[0, 0, 0] : f32 from vector<1x1x1xf32>
      %cst_35 = arith.constant 1.250000e-01 : f32
      %78 = arith.mulf %77, %cst_35 : f32
      %79 = vector.broadcast %78 : f32 to vector<8x128xf32>
      %c0_36 = arith.constant 0 : index
      %c0_37 = arith.constant 0 : index
      %80 = vector.load %arg4[%c0_36, %c0_37] : memref<8x128xf32, #tpu.memory_space<vmem>>, vector<8x128xf32>
      tpu.vector_store %arg4[%c0_36, %c0_37], %79 {strides = array<i32>} : memref<8x128xf32, #tpu.memory_space<vmem>>, vector<8x128xf32>,
    } else {
    }
    return
  }
  func.func @transform_0(%arg0: i32, %arg1: i32) -> (i32, i32) {
    %c1_i32 = arith.constant 1 : i32
    %0 = arith.muli %arg0, %c1_i32 : i32
    %1 = arith.addi %0, %arg1 : i32
    %c0_i32 = arith.constant 0 : i32
    %c0_i32_0 = arith.constant 0 : i32
    return %1, %c0_i32 : i32, i32
  }
  func.func @transform_1(%arg0: i32, %arg1: i32) -> (i32, i32) {
    %c1_i32 = arith.constant 1 : i32
    %0 = arith.muli %arg0, %c1_i32 : i32
    %1 = arith.addi %0, %arg1 : i32
    %c0_i32 = arith.constant 0 : i32
    %c0_i32_0 = arith.constant 0 : i32
    return %1, %c0_i32 : i32, i32
  }
  func.func @transform_2(%arg0: i32, %arg1: i32) -> (i32, i32) {
    %c0_i32 = arith.constant 0 : i32
    %c0_i32_0 = arith.constant 0 : i32
    return %arg0, %c0_i32 : i32, i32
  }
}

</mosaic_0001>

<bundles_post_ra>
// kernel: tpu_custom_call.1
= control target key start
LH: loop header
LB: loop body
LE: loop exit
PB: predicated region body
PF: predicated region fallthrough
CT: control target
= control target key end

     0   :  { %vm93_vm0 = vcmask 64512   ;;  %v380_v2 = vmov 0.0   ;;  %s540_s0 = inlined_call_operand.vmem [shape: f32[128,8], index: 0, kind: input, shape index: {}]   ;;  %s541_s1 = inlined_call_operand.vmem [shape: f32[128,8], index: 1, kind: input, shape index: {}]   ;;  %s542_s2 = inlined_call_operand.hbm [shape: f32[8,128], index: 2, kind: output, shape index: {}]  }
   0x1   :  { %v77_v0 = vld [vmem:[%s540_s0] sm:$0xff]  ;;  %v78_v1 = vld [vmem:[%s540_s0 + $0x8] sm:$0xff]  ;;  %60 = vst [vmem:[#allocation2] sm:$0xff] %v380_v2  ;;  %61 = vst [vmem:[#allocation2 + $0x8] sm:$0xff] %v380_v2 }
   0x2   :  { %62 = vst [vmem:[#allocation2 + $0x10] sm:$0xff] %v380_v2  ;;  %63 = vst [vmem:[#allocation2 + $0x18] sm:$0xff] %v380_v2  ;;  %v79_v3 = vld [vmem:[%s540_s0 + $0x10] sm:$0xff]  ;;  %v80_v4 = vld [vmem:[%s540_s0 + $0x18] sm:$0xff] }
   0x3   :  { %64 = vst [vmem:[#allocation2 + $0x20] sm:$0xff] %v380_v2  ;;  %65 = vst [vmem:[#allocation2 + $0x28] sm:$0xff] %v380_v2  ;;  %v81_v5 = vld [vmem:[%s540_s0 + $0x20] sm:$0xff]  ;;  %v82_v6 = vld [vmem:[%s540_s0 + $0x28] sm:$0xff] }
   0x4   :  { %66 = vst [vmem:[#allocation2 + $0x30] sm:$0xff] %v380_v2  ;;  %67 = vst [vmem:[#allocation2 + $0x38] sm:$0xff] %v380_v2  ;;  %v83_v7 = vld [vmem:[%s540_s0 + $0x30] sm:$0xff]  ;;  %v84_v8 = vld [vmem:[%s540_s0 + $0x38] sm:$0xff] }
   0x5   :  { %68 = vst [vmem:[#allocation2 + $0x40] sm:$0xff] %v380_v2  ;;  %69 = vst [vmem:[#allocation2 + $0x48] sm:$0xff] %v380_v2  ;;  %v158_v9 = vld [vmem:[%s541_s1] sm:$0xff]  ;;  %v159_v10 = vld [vmem:[%s541_s1 + $0x8] sm:$0xff] }
   0x6   :  { %70 = vst [vmem:[#allocation2 + $0x50] sm:$0xff] %v380_v2  ;;  %71 = vst [vmem:[#allocation2 + $0x58] sm:$0xff] %v380_v2  ;;  %v160_v11 = vld [vmem:[%s541_s1 + $0x10] sm:$0xff]  ;;  %v85_v12 = vld [vmem:[%s540_s0 + $0x40] sm:$0xff] }
   0x7   :  { %72 = vst [vmem:[#allocation2 + $0x60] sm:$0xff] %v380_v2  ;;  %73 = vst [vmem:[#allocation2 + $0x68] sm:$0xff] %v380_v2  ;;  %v161_v13 = vld [vmem:[%s541_s1 + $0x18] sm:$0xff]  ;;  %v86_v14 = vld [vmem:[%s540_s0 + $0x48] sm:$0xff] }
   0x8   :  { %74 = vst [vmem:[#allocation2 + $0x70] sm:$0xff] %v380_v2  ;;  %75 = vst [vmem:[#allocation2 + $0x78] sm:$0xff] %v380_v2  ;;  %v87_v15 = vld [vmem:[%s540_s0 + $0x50] sm:$0xff]  ;;  %v162_v16 = vld [vmem:[%s541_s1 + $0x20] sm:$0xff] }
   0x9   :  { %94 = vst.msk [vmem:[#allocation2] sm:$0xff] %vm93_vm0, %v77_v0  ;;  %95 = vst.msk [vmem:[#allocation2 + $0x8] sm:$0xff] %vm93_vm0, %v78_v1  ;;  %v163_v17 = vld [vmem:[%s541_s1 + $0x28] sm:$0xff]  ;;  %v88_v18 = vld [vmem:[%s540_s0 + $0x58] sm:$0xff] }
   0xa   :  { %96 = vst.msk [vmem:[#allocation2 + $0x10] sm:$0xff] %vm93_vm0, %v79_v3  ;;  %97 = vst.msk [vmem:[#allocation2 + $0x18] sm:$0xff] %vm93_vm0, %v80_v4  ;;  %v164_v19 = vld [vmem:[%s541_s1 + $0x30] sm:$0xff]  ;;  %v165_v20 = vld [vmem:[%s541_s1 + $0x38] sm:$0xff] }
   0xb   :  { %98 = vst.msk [vmem:[#allocation2 + $0x20] sm:$0xff] %vm93_vm0, %v81_v5  ;;  %99 = vst.msk [vmem:[#allocation2 + $0x28] sm:$0xff] %vm93_vm0, %v82_v6  ;;  %v89_v21 = vld [vmem:[%s540_s0 + $0x60] sm:$0xff]  ;;  %v90_v22 = vld [vmem:[%s540_s0 + $0x68] sm:$0xff] }
   0xc   :  { %100 = vst.msk [vmem:[#allocation2 + $0x30] sm:$0xff] %vm93_vm0, %v83_v7  ;;  %101 = vst.msk [vmem:[#allocation2 + $0x38] sm:$0xff] %vm93_vm0, %v84_v8  ;;  %v166_v26 = vld [vmem:[%s541_s1 + $0x40] sm:$0xff]  ;;  %v167_v29 = vld [vmem:[%s541_s1 + $0x48] sm:$0xff] }
   0xd   :  { %102 = vst.msk [vmem:[#allocation2 + $0x40] sm:$0xff] %vm93_vm0, %v85_v12  ;;  %103 = vst.msk [vmem:[#allocation2 + $0x48] sm:$0xff] %vm93_vm0, %v86_v14  ;;  %v168_v30 = vld [vmem:[%s541_s1 + $0x50] sm:$0xff]  ;;  %v169_v32 = vld [vmem:[%s541_s1 + $0x58] sm:$0xff] }
   0xe   :  { %104 = vst.msk [vmem:[#allocation2 + $0x50] sm:$0xff] %vm93_vm0, %v87_v15  ;;  %105 = vst.msk [vmem:[#allocation2 + $0x58] sm:$0xff] %vm93_vm0, %v88_v18  ;;  %v91_v33 = vld [vmem:[%s540_s0 + $0x70] sm:$0xff]  ;;  %v92_v36 = vld [vmem:[%s540_s0 + $0x78] sm:$0xff] }
   0xf   :  { %106 = vst.msk [vmem:[#allocation2 + $0x60] sm:$0xff] %vm93_vm0, %v89_v21  ;;  %107 = vst.msk [vmem:[#allocation2 + $0x68] sm:$0xff] %vm93_vm0, %v90_v22  ;;  %v170_v38 = vld [vmem:[%s541_s1 + $0x60] sm:$0xff] }
  0x10   :  { %v110_v23 = vld [vmem:[#allocation2] sm:$0xff]  ;;  %v111_v24 = vld [vmem:[#allocation2 + $0x8] sm:$0xff]  ;;  %108 = vst.msk [vmem:[#allocation2 + $0x70] sm:$0xff] %vm93_vm0, %v91_v33  ;;  %109 = vst.msk [vmem:[#allocation2 + $0x78] sm:$0xff] %vm93_vm0, %v92_v36 }
  0x11   :  { %v112_v25 = vld [vmem:[#allocation2 + $0x10] sm:$0xff]  ;;  %126 = vxpose.xlu0.b32.start [1/16] (narrow) %v110_v23, 8  ;;  %174 = vst.msk [vmem:[#allocation2] sm:$0xff] %vm93_vm0, %v158_v9  ;;  %175 = vst.msk [vmem:[#allocation2 + $0x8] sm:$0xff] %vm93_vm0, %v159_v10  ;;  %v113_v27 = vld [vmem:[#allocation2 + $0x18] sm:$0xff] }
  0x12   :  { %176 = vst.msk [vmem:[#allocation2 + $0x10] sm:$0xff] %vm93_vm0, %v160_v11  ;;  %v114_v28 = vld [vmem:[#allocation2 + $0x20] sm:$0xff]  ;;  %177 = vst.msk [vmem:[#allocation2 + $0x18] sm:$0xff] %vm93_vm0, %v161_v13  ;;  %v115_v31 = vld [vmem:[#allocation2 + $0x28] sm:$0xff] }
  0x13   :  { %178 = vst.msk [vmem:[#allocation2 + $0x20] sm:$0xff] %vm93_vm0, %v162_v16  ;;  %179 = vst.msk [vmem:[#allocation2 + $0x28] sm:$0xff] %vm93_vm0, %v163_v17  ;;  %v116_v34 = vld [vmem:[#allocation2 + $0x30] sm:$0xff]  ;;  %v117_v35 = vld [vmem:[#allocation2 + $0x38] sm:$0xff] }
  0x14   :  { %180 = vst.msk [vmem:[#allocation2 + $0x30] sm:$0xff] %vm93_vm0, %v164_v19  ;;  %181 = vst.msk [vmem:[#allocation2 + $0x38] sm:$0xff] %vm93_vm0, %v165_v20  ;;  %v118_v37 = vld [vmem:[#allocation2 + $0x40] sm:$0xff] }
  0x15   :  { %7 = vsyncpa [#allocation5], 0  ;;  %127 = vxpose.xlu0.b32.cont [2/16] (narrow) %v111_v24, 8  ;;  %182 = vst.msk [vmem:[#allocation2 + $0x40] sm:$0xff] %vm93_vm0, %v166_v26  ;;  %v119_v39 = vld [vmem:[#allocation2 + $0x48] sm:$0xff]  ;;  %v120_v40 = vld [vmem:[#allocation2 + $0x50] sm:$0xff]  ;;  %v238_v1 = vlaneseq }
  0x16   :  { %v171_v41 = vld [vmem:[%s541_s1 + $0x68] sm:$0xff]  ;;  %183 = vst.msk [vmem:[#allocation2 + $0x48] sm:$0xff] %vm93_vm0, %v167_v29  ;;  %184 = vst.msk [vmem:[#allocation2 + $0x50] sm:$0xff] %vm93_vm0, %v168_v30  ;;  %v121_v42 = vld [vmem:[#allocation2 + $0x58] sm:$0xff] }
  0x17   :  { %185 = vst.msk [vmem:[#allocation2 + $0x58] sm:$0xff] %vm93_vm0, %v169_v32  ;;  %v122_v43 = vld [vmem:[#allocation2 + $0x60] sm:$0xff]  ;;  %v123_v44 = vld [vmem:[#allocation2 + $0x68] sm:$0xff]  ;;  %v172_v46 = vld [vmem:[%s541_s1 + $0x70] sm:$0xff]  ;;  %v239_v2 = vshrl.u32 %v238_v1, 7  ;;  %v244_v33 = vand.u32 127, %v238_v1 }
  0x18   :  { %v190_v45 = vld [vmem:[#allocation2] sm:$0xff]  ;;  %186 = vst.msk [vmem:[#allocation2 + $0x60] sm:$0xff] %vm93_vm0, %v170_v38  ;;  %187 = vst.msk [vmem:[#allocation2 + $0x68] sm:$0xff] %vm93_vm0, %v171_v41  ;;  %v173_v47 = vld [vmem:[%s541_s1 + $0x78] sm:$0xff]  ;;  %s381_s1 = smov [#allocation4]  }
  0x19   :  { %128 = vxpose.xlu0.b32.cont [3/16] (narrow) %v112_v25, 8  ;;  %206 = vxpose.xlu1.b32.start [1/16] (narrow) %v190_v45, 8  ;;  %v191_v48 = vld [vmem:[#allocation2 + $0x8] sm:$0xff]  ;;  %v124_v49 = vld [vmem:[#allocation2 + $0x70] sm:$0xff]  ;;  %v125_v50 = vld [vmem:[#allocation2 + $0x78] sm:$0xff]  ;;  %vm240_vm1 = vcmp.ge.s32.totalorder %v239_v2, 2 }
  0x1a   :  { %188 = vst.msk [vmem:[#allocation2 + $0x70] sm:$0xff] %vm93_vm0, %v172_v46  ;;  %189 = vst.msk [vmem:[#allocation2 + $0x78] sm:$0xff] %vm93_vm0, %v173_v47  ;;  %v192_v51 = vld [vmem:[#allocation2 + $0x10] sm:$0xff]  ;;  %v193_v52 = vld [vmem:[#allocation2 + $0x18] sm:$0xff]  ;;  %vm249_vm3 = vcmp.lt.s32.totalorder %v244_v33, 8  ;;  %vm250_vm4 = vcmp.lt.s32.totalorder %v239_v2, 2 }
  0x1b   :  { %v194_v53 = vld [vmem:[#allocation2 + $0x20] sm:$0xff]  ;;  %v195_v54 = vld [vmem:[#allocation2 + $0x28] sm:$0xff]  ;;  %v196_v55 = vld [vmem:[#allocation2 + $0x30] sm:$0xff]  ;;  %s324_s16 = sshll.u32 %s381_s1, 4  ;;  %s325_s16 = int_to_ptr.vmem [resolvable:$true] %s324_s16 }
  0x1c   :  { %v197_v56 = vld [vmem:[#allocation2 + $0x38] sm:$0xff]  ;;  %v198_v57 = vld [vmem:[#allocation2 + $0x40] sm:$0xff]  ;;  %vm270_vm5 = vmand %vm250_vm4, %vm249_vm3  ;;  %s356_s19 = scalar_lea.vmem %s325_s16, 128  ;;  %p361_p1 = scmp.lt.s32.totalorder %s325_s16, %s325_s16 }
  0x1d   :  { %129 = vxpose.xlu0.b32.cont [4/16] (narrow) %v113_v27, 8  ;;  %207 = vxpose.xlu1.b32.cont [2/16] (narrow) %v191_v48, 8  ;;  %v199_v58 = vld [vmem:[#allocation2 + $0x48] sm:$0xff]  ;;  %v200_v59 = vld [vmem:[#allocation2 + $0x50] sm:$0xff]  ;;  %p357_p0 = scmp.ne.s32.totalorder %s325_s16, %s356_s19  ;;  %p362_p2 = scmp.lt.s32.totalorder %s356_s19, %s356_s19 }
  0x1e   :  { %v201_v60 = vld [vmem:[#allocation2 + $0x58] sm:$0xff] }
  0x1f   :  { %v202_v61 = vld [vmem:[#allocation2 + $0x60] sm:$0xff]  ;;  %v203_v62 = vld [vmem:[#allocation2 + $0x68] sm:$0xff]  ;;  %p363_p3 = por %p362_p2, %p361_p1 }
  0x21   :  { %130 = vxpose.xlu0.b32.cont [5/16] (narrow) %v114_v28, 8  ;;  %208 = vxpose.xlu1.b32.cont [3/16] (narrow) %v192_v51, 8  ;;  %v204_v63 = vld [vmem:[#allocation2 + $0x70] sm:$0xff]  ;;  %v205_v0 = vld [vmem:[#allocation2 + $0x78] sm:$0xff]  ;;  %p364_p4 = pnand %p363_p3, %p357_p0 }
  0x25   :  { %131 = vxpose.xlu0.b32.cont [6/16] (narrow) %v115_v31, 8  ;;  %209 = vxpose.xlu1.b32.cont [4/16] (narrow) %v193_v52, 8 }
  0x29   :  { %132 = vxpose.xlu0.b32.cont [7/16] (narrow) %v116_v34, 8  ;;  %210 = vxpose.xlu1.b32.cont [5/16] (narrow) %v194_v53, 8 }
  0x2d   :  { %133 = vxpose.xlu0.b32.cont [8/16] (narrow) %v117_v35, 8  ;;  %211 = vxpose.xlu1.b32.cont [6/16] (narrow) %v195_v54, 8 }
  0x31   :  { %134 = vxpose.xlu0.b32.cont [9/16] (narrow) %v118_v37, 8  ;;  %212 = vxpose.xlu1.b32.cont [7/16] (narrow) %v196_v55, 8 }
  0x35   :  { %135 = vxpose.xlu0.b32.cont [10/16] (narrow) %v119_v39, 8  ;;  %213 = vxpose.xlu1.b32.cont [8/16] (narrow) %v197_v56, 8 }
  0x39   :  { %136 = vxpose.xlu0.b32.cont [11/16] (narrow) %v120_v40, 8  ;;  %214 = vxpose.xlu1.b32.cont [9/16] (narrow) %v198_v57, 8 }
  0x3d   :  { %137 = vxpose.xlu0.b32.cont [12/16] (narrow) %v121_v42, 8  ;;  %215 = vxpose.xlu1.b32.cont [10/16] (narrow) %v199_v58, 8 }
  0x41   :  { %138 = vxpose.xlu0.b32.cont [13/16] (narrow) %v122_v43, 8  ;;  %216 = vxpose.xlu1.b32.cont [11/16] (narrow) %v200_v59, 8 }
  0x45   :  { %139 = vxpose.xlu0.b32.cont [14/16] (narrow) %v123_v44, 8  ;;  %217 = vxpose.xlu1.b32.cont [12/16] (narrow) %v201_v60, 8 }
  0x49   :  { %140 = vxpose.xlu0.b32.cont [15/16] (narrow) %v124_v49, 8  ;;  %218 = vxpose.xlu1.b32.cont [13/16] (narrow) %v202_v61, 8 }
  0x4d   :  { %141 = vxpose.xlu0.b32.end [16/16] (narrow) %v125_v50, 8  ;;  %219 = vxpose.xlu1.b32.cont [14/16] (narrow) %v203_v62, 8 }
  0x51   :  { %220 = vxpose.xlu1.b32.cont [15/16] (narrow) %v204_v63, 8 }
  0x55   :  { %221 = vxpose.xlu1.b32.end [16/16] (narrow) %v205_v0, 8 }
  0x91   :  { %v142_v3 = vpop.trf.xlu0 }
  0x92   :  { %v276_v4 = vsel %vm240_vm1, %v142_v3, -1e+30  ;;  %v254_v6 = vand.u32 2147483647, %v142_v3  ;;  %v251_v35 = vmax.f32 %v142_v3, 0.0 }
  0x93   :  { %v277_v5 = vrot.slane %v276_v4, 4 }
  0x94   :  { %v255_v9 = vsub.f32 0.0, %v254_v6 }
  0x95   :  { %v278_v7 = vmax.f32 %v276_v4, %v277_v5 }
  0x96   :  { %v256_v12 = vmul.f32 1.442695, %v255_v9 }
  0x97   :  { %v279_v8 = vrot.slane %v278_v7, 2 }
  0x98   :  { %348 = vpow2.f32 %v256_v12 }
  0x99   :  { %v280_v10 = vmax.f32 %v278_v7, %v279_v8  ;;  %v222_v29 = vpop.trf.xlu1 }
  0x9a   :  { %v252_v32 = vmul.f32 %v222_v29, %v142_v3 }
  0x9b   :  { %v281_v11 = vrot.slane %v280_v10, 1 }
  0x9c   :  { %v253_v37 = vsub.f32 %v251_v35, %v252_v32 }
  0x9d   :  { %v282_v13 = vmax.f32 %v280_v10, %v281_v11 }
  0x9f   :  { %v283_v14 = vsub.f32 %v276_v4, %v282_v13 }
  0xa1   :  { %v284_v15 = vmul.f32 1.442695, %v283_v14 }
  0xa2   :  { %v349_v16 = vpop.eup %348 }
  0xa3   :  { %350 = vpow2.f32 %v284_v15  ;;  %v258_v18 = vadd.f32 1.0, %v349_v16  ;;  %v261_v25 = vmul.f32 -0.5, %v349_v16  ;;  %v264_v30 = vand.u32 2147483647, %v349_v16 }
  0xa5   :  { %352 = vlog2.f32 %v258_v18  ;;  %v262_v28 = vadd.f32 1.0, %v261_v25  ;;  %vm265_vm2 = vcmp.lt.f32.partialorder %v264_v30, 0.0004427343 }
  0xa7   :  { %v263_v34 = vmul.f32 %v349_v16, %v262_v28 }
  0xad   :  { %v351_v17 = vpop.eup %350 }
  0xae   :  { %v286_v19 = vsel %vm240_vm1, %v351_v17, 0.0 }
  0xaf   :  { %v287_v20 = vrot.slane %v286_v19, 4  ;;  %v353_v27 = vpop.eup %352 }
  0xb0   :  { %v260_v31 = vmul.f32 0.6931472, %v353_v27 }
  0xb1   :  { %v288_v21 = vadd.f32 %v287_v20, %v286_v19 }
  0xb2   :  { %v266_v36 = vsel %vm265_vm2, %v263_v34, %v260_v31 }
  0xb3   :  { %v289_v22 = vrot.slane %v288_v21, 2  ;;  %v267_v40 = vadd.f32 %v266_v36, %v253_v37 }
  0xb5   :  { %v290_v23 = vadd.f32 %v289_v22, %v288_v21  ;;  %v271_v43 = vsel %vm270_vm5, %v267_v40, 0.0 }
  0xb6   :  { %v273_v45 = vmul.f32 0.5, %v271_v43 }
  0xb7   :  { %v291_v24 = vrot.slane %v290_v23, 1 }
  0xb9   :  { %v292_v26 = vadd.f32 %v291_v24, %v290_v23 }
  0xbb   :  { %354 = vlog2.f32 %v292_v26 }
  0xc5   :  { %v355_v38 = vpop.eup %354 }
  0xc6   :  { %v294_v39 = vmul.f32 0.6931472, %v355_v38 }
  0xc8   :  { %v295_v41 = vadd.f32 %v294_v39, %v282_v13 }
  0xca   :  { %v296_v42 = vsub.f32 %v295_v41, %v142_v3 }
  0xcc   :  { %v297_v44 = vmul.f32 %v296_v42, %v222_v29 }
  0xce   :  { %v298_v46 = vsel %vm240_vm1, %v297_v44, 0.0 }
  0xcf   :  { %v300_v47 = vadd.f32 %v298_v46, %v273_v45 }
  0xd1   :  { %306 = vadd.xlane.f32.xlu0 %v300_v47 }
 0x15e   :  { %v307_v48 = vpop.xlane.xlu0 %306 }
 0x15f   :  { %v308_v49 = vrot.slane %v307_v48, 4 }
 0x161   :  { %v309_v50 = vadd.f32 %v308_v49, %v307_v48 }
 0x163   :  { %v310_v51 = vrot.slane %v309_v50, 2 }
 0x165   :  { %v311_v52 = vadd.f32 %v310_v51, %v309_v50 }
 0x167   :  { %v312_v53 = vrot.slane %v311_v52, 1 }
 0x169   :  { %v313_v54 = vadd.f32 %v312_v53, %v311_v52 }
 0x16b   :  { %344 = vpush %v313_v54 }
 0x19c   :  { %s345_s17 = spop %344 }
 0x19d   :  { %s315_s18 = smul.f32 0.125, %s345_s17 }
 0x19f   :  { %v316_v55 = vstv %s315_s18 }
 0x1a0   :  { %317 = vst [vmem:[#allocation4] sm:$0xff] %v316_v55 }
 0x1a1   :  { %367 = shalt.err (!%p364_p4)
}
 0x1a2   :  { %s368_s22 = scalar_lea.hbm %s542_s2, 128 }
 0x1a3   :  { %p369_p5 = scmp.ne.s32.totalorder %s542_s2, %s368_s22  ;;  %p372_p6 = scmp.lt.u32.totalorder %s368_s22, %s542_s2 }
 0x1a5   :  { %p374_p7 = pnand %p372_p6, %p369_p5 }
 0x1a7   :  { %377 = shalt.err (!%p374_p7)
}
 0x1a8   :  { %327 = dma.vmem_to_hbm [thread:$0]  %s325_s16, 128, %s542_s2, [#allocation5]  }
 0x1a9   :  { %378 = dma.done.wait [#allocation5], 128  }
 0x1aa   :  { %379 = vsyncadd [#allocation5], 4294967168 }
 0x1ab   :  { %331 = vsyncpa [#allocation5], 1 }

</bundles_post_ra>
